<compile_context>
chip_gen: v7x
topology: tpu7x:2x2x1
jax: 0.10.0
libtpu: 0.0.40
codegen_flags: <defaults>
</compile_context>

<pallas_src>
import functools

import jax
import jax.numpy as jnp
from jax.experimental import pallas as pl
from jax.experimental.pallas import tpu as pltpu


# ----------------------------------------------------------------------------
# Kernels
# ----------------------------------------------------------------------------
def _conv1x1_kernel(x_ref, w_ref, b_ref, o_ref):
    # Resident-weight path.
    # x_ref: (C_in, TM)   activation tile (lane axis = spatial positions)
    # w_ref: (C_out, C_in) full weight (stationary across the grid)
    # b_ref: (C_out, 1)   f32 bias column
    # o_ref: (C_out, TM)  lane-dense output tile
    acc = jnp.dot(w_ref[...], x_ref[...], preferred_element_type=jnp.float32)
    o_ref[...] = (acc + b_ref[...]).astype(o_ref.dtype)


def _conv1x1_ksplit_kernel(x_ref, w_ref, b_ref, o_ref, acc_ref):
    # K-split path (large C_in): grid axis 2 walks C_in chunks; f32 VMEM
    # accumulator with pl.when init/finalize.
    # x_ref: (TK, TM), w_ref: (C_out, TK), b_ref: (C_out, 1) f32,
    # o_ref: (C_out, TM), acc_ref: (C_out, TM) f32 scratch.
    k = pl.program_id(2)

    @pl.when(k == 0)
    def _():
        acc_ref[...] = jnp.zeros_like(acc_ref)

    acc_ref[...] += jnp.dot(
        w_ref[...], x_ref[...], preferred_element_type=jnp.float32
    )

    @pl.when(k == pl.num_programs(2) - 1)
    def _():
        o_ref[...] = (acc_ref[...] + b_ref[...]).astype(o_ref.dtype)


# ----------------------------------------------------------------------------
# Tiling / VMEM budgeting helpers
# ----------------------------------------------------------------------------
_FALLBACK_VMEM_CAP = 64 * 1024 * 1024  # conservative: v7x per-TC physical VMEM


@functools.lru_cache(maxsize=1)
def _vmem_capacity_bytes():
    """Physical VMEM per core; conservative fallback if the query fails."""
    try:
        info = pltpu.get_tpu_info()
        for attr in ("vmem_capacity_bytes", "vmem_size_bytes", "vmem_bytes"):
            cap = getattr(info, attr, None)
            if isinstance(cap, int) and cap > 0:
                return cap
    except Exception:  # noqa: BLE001 - any failure => conservative default
        pass
    return _FALLBACK_VMEM_CAP


def _choose_row_tile(n, hw, per_col_bytes, budget_bytes):
    """Pick the lane tile TM.

    * multiple of 128 (lane-dense loads/stores), sized so the double-buffered
      per-column traffic fits `budget_bytes`,
    * never larger than the (128-rounded) spatial extent,
    * reduced until the grid exposes >=2 "parallel" steps when possible
      (v7x has 2 TensorCores fed by sharding parallel grid axes),
    * collapsed to the exact extent when it covers the whole row (a
      full-extent block is always layout-legal).
    """
    tm = max(128, (budget_bytes // max(per_col_bytes, 1)) // 128 * 128)
    tm = min(tm, pl.cdiv(hw, 128) * 128)
    while n * pl.cdiv(hw, tm) < 2 and tm > 128:
        tm = max(128, (tm // 2) // 128 * 128)
    if tm >= hw:
        tm = hw
    return tm


# ----------------------------------------------------------------------------
# Forward
# ----------------------------------------------------------------------------
@functools.partial(
    jax.jit,
    static_argnames=("stride", "padding", "use_bf16",
                     "weight_resident_limit_bytes"),
)
def down_activ_up_forward(x_nchw, weight, bias, *, stride=(1, 1),
                          padding=(0, 0), use_bf16=False,
                          weight_resident_limit_bytes=None):
    """Forward of DownActivUp with kernel_size=(1,1) (hard_limit path).

    x_nchw : (N, C_in, H, W)
    weight : (C_out, C_in, 1, 1)
    bias   : (C_out,)
    returns: (N, C_out, H_out, W_out) in x_nchw.dtype
    """
    n, c_in, h, w = x_nchw.shape
    c_out = weight.shape[0]
    sh, sw = stride
    ph, pw = padding
    out_dtype = x_nchw.dtype

    # For a 1x1 kernel, spatial padding / stride are pure slicing ops.  They
    # are skipped entirely in the common (stride=1, padding=0) case.
    if ph or pw:
        x_nchw = jnp.pad(x_nchw, ((0, 0), (0, 0), (ph, ph), (pw, pw)))
    if sh != 1 or sw != 1:
        x_nchw = x_nchw[:, :, ::sh, ::sw]
    _, _, h_out, w_out = x_nchw.shape
    hw = h_out * w_out

    # Weight-stationary layout: NCHW -> (N, C_in, H*W) is a free reshape; the
    # large spatial dim sits on the 128-lane axis for loads AND stores.
    compute_dtype = jnp.bfloat16 if use_bf16 else x_nchw.dtype
    x_rows = x_nchw.reshape(n, c_in, hw).astype(compute_dtype)
    w_mat = weight.reshape(c_out, c_in).astype(compute_dtype)
    b_col = bias.reshape(c_out, 1).astype(jnp.float32)   # bias add stays f32

    itemsize = jnp.dtype(compute_dtype).itemsize
    out_itemsize = jnp.dtype(out_dtype).itemsize

    # --- per-generation VMEM budgeting -------------------------------------
    vmem_cap = _vmem_capacity_bytes()
    # 96 MiB scoped limit on 128-MiB-VMEM chips (v5e/v6e), 48 MiB on v7x.
    vmem_limit = max(32 << 20, min((vmem_cap * 3) // 4, 96 << 20))
    if weight_resident_limit_bytes is None:
        weight_limit = min(16 << 20, vmem_limit // 4)
    else:
        weight_limit = int(weight_resident_limit_bytes)

    headroom = 2 << 20
    weight_bytes = 2 * c_out * c_in * itemsize        # counted double-buffered
    bias_bytes = 2 * c_out * 4

    use_ksplit = (weight_bytes > weight_limit) and (c_in % 128 == 0)
    # TODO(synk): if c_in is not a multiple of 128 and the weight exceeds the
    # resident limit, we still fall back to a fully resident weight (masking
    # the ragged reduction chunk inside the kernel is not implemented).

    if not use_ksplit:
        budget = max(vmem_limit - weight_bytes - bias_bytes - headroom,
                     4 << 20)
        per_col = 2 * c_in * itemsize + 2 * c_out * out_itemsize
        tm = _choose_row_tile(n, hw, per_col, budget)
        n_tiles = pl.cdiv(hw, tm)
        grid = (n, n_tiles)
        kernel = _conv1x1_kernel
        in_specs = [
            # batch dim squeezed out of the kernel view via `None`
            pl.BlockSpec((None, c_in, tm), lambda b, j: (b, 0, j)),
            pl.BlockSpec((c_out, c_in), lambda b, j: (0, 0)),
            pl.BlockSpec((c_out, 1), lambda b, j: (0, 0)),
        ]
        out_specs = pl.BlockSpec((None, c_out, tm), lambda b, j: (b, 0, j))
        scratch_shapes = []
        dim_sem = ("parallel", "parallel")
    else:
        # Largest multiple-of-128 chunk of C_in that divides it and keeps the
        # (double-buffered) weight tile under the resident limit.
        tk = 128
        d = 128
        while d <= c_in:
            if c_in % d == 0 and 2 * c_out * d * itemsize <= weight_limit:
                tk = d
            d += 128
        k_tiles = c_in // tk
        resident = 2 * c_out * tk * itemsize + bias_bytes
        budget = max(vmem_limit - resident - headroom, 4 << 20)
        per_col = (2 * tk * itemsize + 2 * c_out * out_itemsize
                   + c_out * 4)                        # + f32 accumulator
        tm = _choose_row_tile(n, hw, per_col, budget)
        n_tiles = pl.cdiv(hw, tm)
        grid = (n, n_tiles, k_tiles)                   # reduction axis last
        kernel = _conv1x1_ksplit_kernel
        in_specs = [
            pl.BlockSpec((None, tk, tm), lambda b, j, k: (b, k, j)),
            pl.BlockSpec((c_out, tk), lambda b, j, k: (0, k)),
            pl.BlockSpec((c_out, 1), lambda b, j, k: (0, 0)),
        ]
        out_specs = pl.BlockSpec((None, c_out, tm), lambda b, j, k: (b, 0, j))
        scratch_shapes = [pltpu.VMEM((c_out, tm), jnp.float32)]
        dim_sem = ("parallel", "parallel", "arbitrary")

    flops = 2 * n * hw * c_in * c_out
    bytes_accessed = (
        n * c_in * hw * itemsize          # x
        + c_out * c_in * itemsize         # weight
        + c_out * 4                       # bias
        + n * c_out * hw * out_itemsize   # out
    )

    out_rows = pl.pallas_call(
        kernel,
        out_shape=jax.ShapeDtypeStruct((n, c_out, hw), out_dtype),
        grid_spec=pltpu.PrefetchScalarGridSpec(
            num_scalar_prefetch=0,
            grid=grid,
            in_specs=in_specs,
            out_specs=out_specs,
            scratch_shapes=scratch_shapes,
        ),
        compiler_params=pltpu.CompilerParams(
            dimension_semantics=dim_sem,
            vmem_limit_bytes=vmem_limit,
        ),
        cost_estimate=pl.CostEstimate(
            flops=flops, transcendentals=0, bytes_accessed=bytes_accessed),
    )(x_rows, w_mat, b_col)

    return out_rows.reshape(n, c_out, h_out, w_out)


# ----------------------------------------------------------------------------
# Init / reference / self-test
# ----------------------------------------------------------------------------
def init_params(key, in_channels, out_channels, kernel_size=(1, 1)):
    """nn.init.kaiming_normal_(mode='fan_out', nonlinearity='relu') weight,
    zeros bias (matches the module's _initialize_weights)."""
    kh, kw = kernel_size
    fan_out = out_channels * kh * kw
    std = (2.0 / fan_out) ** 0.5
    weight = std * jax.random.normal(
        key, (out_channels, in_channels, kh, kw), dtype=jnp.float32)
    bias = jnp.zeros((out_channels,), dtype=jnp.float32)
    return weight, bias


def _reference(x, weight, bias, stride, padding):
    ph, pw = padding
    out = jax.lax.conv_general_dilated(
        x, weight, window_strides=stride, padding=((ph, ph), (pw, pw)),
        dimension_numbers=("NCHW", "OIHW", "NCHW"),
        precision=jax.lax.Precision.HIGHEST)
    return out + bias.reshape(1, -1, 1, 1)


if __name__ == "__main__":
    key = jax.random.PRNGKey(0)
    k_x, k_w, k_x2, k_w2 = jax.random.split(key, 4)

    # 1) Default config: stride=1, padding=0 (resident-weight path).
    N, C_IN, H, W, C_OUT = 2, 4, 16, 16, 8
    x = jax.random.normal(k_x, (N, C_IN, H, W), dtype=jnp.float32)
    weight, bias = init_params(k_w, C_IN, C_OUT, kernel_size=(1, 1))
    out = jax.block_until_ready(down_activ_up_forward(x, weight, bias))
    ref = _reference(x, weight, bias, (1, 1), (0, 0))
    assert out.shape == (N, C_OUT, H, W), out.shape
    assert jnp.allclose(out, ref, atol=1e-5, rtol=1e-5), float(
        jnp.max(jnp.abs(out - ref)))

    # 2) Strided / padded variant (full-extent lane tile, hw=81).
    out2 = jax.block_until_ready(
        down_activ_up_forward(x, weight, bias, stride=(2, 2), padding=(1, 1)))
    ref2 = _reference(x, weight, bias, (2, 2), (1, 1))
    assert out2.shape == ref2.shape, (out2.shape, ref2.shape)
    assert jnp.allclose(out2, ref2, atol=1e-5, rtol=1e-5), float(
        jnp.max(jnp.abs(out2 - ref2)))

    # 3) Ragged last lane tile: N=1 forces >=2 tiles and 324 % 128 != 0, so the
    #    last block is masked (no wrapper pad/slice HBM passes).
    x3 = jax.random.normal(k_x2, (1, C_IN, 18, 18), dtype=jnp.float32)
    out3 = jax.block_until_ready(down_activ_up_forward(x3, weight, bias))
    ref3 = _reference(x3, weight, bias, (1, 1), (0, 0))
    assert out3.shape == ref3.shape, (out3.shape, ref3.shape)
    assert jnp.allclose(out3, ref3, atol=1e-5, rtol=1e-5), float(
        jnp.max(jnp.abs(out3 - ref3)))

    # 4) K-split accumulator path (forced via a tiny resident-weight limit).
    C_IN4, C_OUT4 = 256, 16
    x4 = jax.random.normal(k_x2, (1, C_IN4, 8, 8), dtype=jnp.float32)
    w4, b4 = init_params(k_w2, C_IN4, C_OUT4, kernel_size=(1, 1))
    out4 = jax.block_until_ready(
        down_activ_up_forward(x4, w4, b4, weight_resident_limit_bytes=1))
    ref4 = _reference(x4, w4, b4, (1, 1), (0, 0))
    assert out4.shape == ref4.shape, (out4.shape, ref4.shape)
    assert jnp.allclose(out4, ref4, atol=1e-3, rtol=1e-3), float(
        jnp.max(jnp.abs(out4 - ref4)))

    # 5) Opt-in bf16 MXU path (looser tolerance vs the f32 reference).
    out5 = jax.block_until_ready(
        down_activ_up_forward(x, weight, bias, use_bf16=True))
    assert jnp.allclose(out5, ref, atol=5e-2, rtol=5e-2), float(
        jnp.max(jnp.abs(out5 - ref)))

    print("KERNEL_OK")
</pallas_src>

<mosaic_0001>
module attributes {stable_mosaic.version = 11 : i64} {
  func.func @_conv1x1_kernel(%arg0: i32, %arg1: i32, %arg2: memref<1x4x256xf32, #tpu.memory_space<vmem>>, %arg3: memref<8x4xf32, #tpu.memory_space<vmem>>, %arg4: memref<8x1xf32, #tpu.memory_space<vmem>>, %arg5: memref<1x8x256xf32, #tpu.memory_space<vmem>>) attributes {dimension_semantics = [#tpu.dimension_semantics<parallel>, #tpu.dimension_semantics<parallel>], iteration_bounds = array<i64: 2, 1>, scalar_prefetch = 0 : i64, scratch_operands = 0 : i64, tpu.core_type = #tpu.core_type<tc>, window_params = [{transform_indices = @transform_0, window_bounds = array<i64: 1, 4, 256>}, {pipeline_mode = #tpu.pipeline_mode<synchronous>, transform_indices = @transform_1, window_bounds = array<i64: 8, 4>}, {pipeline_mode = #tpu.pipeline_mode<synchronous>, transform_indices = @transform_2, window_bounds = array<i64: 8, 1>}, {transform_indices = @transform_3, window_bounds = array<i64: 1, 8, 256>}]} {
    %c0 = arith.constant 0 : index
    %c0_0 = arith.constant 0 : index
    %0 = vector.load %arg3[%c0, %c0_0] : memref<8x4xf32, #tpu.memory_space<vmem>>, vector<8x4xf32>
    %c0_1 = arith.constant 0 : index
    %c0_2 = arith.constant 0 : index
    %c0_3 = arith.constant 0 : index
    %1 = vector.load %arg2[%c0_1, %c0_2, %c0_3] : memref<1x4x256xf32, #tpu.memory_space<vmem>>, vector<1x4x256xf32>
    %2 = vector.shape_cast %1 : vector<1x4x256xf32> to vector<4x256xf32>
    %cst = arith.constant dense<0.000000e+00> : vector<8x256xf32>
    %3 = tpu.matmul %0, %2, %cst {dimension_numbers = #tpu.dot_dimension_numbers<[1], [0], [0], [1], [0, 0, 1, 1], [], []>} : vector<8x4xf32>, vector<4x256xf32>, vector<8x256xf32> -> vector<8x256xf32>
    %c0_4 = arith.constant 0 : index
    %c0_5 = arith.constant 0 : index
    %4 = vector.load %arg4[%c0_4, %c0_5] : memref<8x1xf32, #tpu.memory_space<vmem>>, vector<8x1xf32>
    %5 = vector.broadcast %4 : vector<8x1xf32> to vector<8x256xf32>
    %6 = arith.addf %3, %5 : vector<8x256xf32>
    %c0_6 = arith.constant 0 : index
    %c0_7 = arith.constant 0 : index
    %c0_8 = arith.constant 0 : index
    %7 = vector.load %arg5[%c0_6, %c0_7, %c0_8] : memref<1x8x256xf32, #tpu.memory_space<vmem>>, vector<1x8x256xf32>
    %8 = vector.shape_cast %7 : vector<1x8x256xf32> to vector<8x256xf32>
    %9 = vector.shape_cast %6 : vector<8x256xf32> to vector<1x8x256xf32>
    tpu.vector_store %arg5[%c0_6, %c0_7, %c0_8], %9 {strides = array<i32>} : memref<1x8x256xf32, #tpu.memory_space<vmem>>, vector<1x8x256xf32>,
    return
  }
  func.func @transform_0(%arg0: i32, %arg1: i32) -> (i32, i32, i32) {
    %c0_i32 = arith.constant 0 : i32
    %c0_i32_0 = arith.constant 0 : i32
    return %arg0, %c0_i32, %arg1 : i32, i32, i32
  }
  func.func @transform_1(%arg0: i32, %arg1: i32) -> (i32, i32) {
    %c0_i32 = arith.constant 0 : i32
    %c0_i32_0 = arith.constant 0 : i32
    %c0_i32_1 = arith.constant 0 : i32
    return %c0_i32, %c0_i32_0 : i32, i32
  }
  func.func @transform_2(%arg0: i32, %arg1: i32) -> (i32, i32) {
    %c0_i32 = arith.constant 0 : i32
    %c0_i32_0 = arith.constant 0 : i32
    %c0_i32_1 = arith.constant 0 : i32
    return %c0_i32, %c0_i32_0 : i32, i32
  }
  func.func @transform_3(%arg0: i32, %arg1: i32) -> (i32, i32, i32) {
    %c0_i32 = arith.constant 0 : i32
    %c0_i32_0 = arith.constant 0 : i32
    return %arg0, %c0_i32, %arg1 : i32, i32, i32
  }
}

</mosaic_0001>

<bundles_post_ra>
// kernel: down_activ_up_forward.1
= control target key start
LH: loop header
LB: loop body
LE: loop exit
PB: predicated region body
PF: predicated region fallthrough
CT: control target
= control target key end

     0   :  { %s479_s12 = smov 0   ;;  %s481_s13 = smov 0   ;;  %s518_s0 = inlined_call_operand.vmem [shape: f32[2,4,256], index: 0, kind: input, shape index: {}]   ;;  %s519_s1 = inlined_call_operand.vmem [shape: f32[8,4], index: 1, kind: input, shape index: {}]   ;;  %s520_s2 = inlined_call_operand.vmem [shape: f32[8,1], index: 2, kind: input, shape index: {}]   ;;  %s521_s3 = inlined_call_operand.vmem [shape: f32[2,8,256], index: 3, kind: output, shape index: {}]  }
   0x1   :  { %s483_s14 = smov 0  }
   0x2 LB: > { %s25_s15 = sadd.s32 1, %s451_s13  ;;  %p393_p0 = scmp.ge.s32.totalorder %s455_s14, 1  ;;  %s455_s14 = sphi %s483_s14, %s13_s14   ;;  %s451_s13 = sphi %s481_s13, %s523_s13   ;;  %s447_s12 = sphi %s479_s12, %s522_s12  }
   0x3   : > { %p27_p1 = scmp.ge.s32.totalorder %s25_s15, 2  ;;  %p158_p2 = scmp.lt.s32.totalorder %s455_s14, 3 }
   0x5   : > { %s525_s15 = smov (%p27_p1, %s25_s15), 0  ;;  %p159_p3 = pnand %p393_p0, %p158_p2 }
   0x6   : > { %p191_p4 = scmp.lt.s32.totalorder (!%p159_p3), %s447_s12, 1  ;;  %v457_v0 = vmov (!%p159_p3), 0.0   ;;  %v458_v1 = vmov (!%p159_p3), 0   ;;  %v212_v2 = vld [vmem:[%s520_s2] sm:$0xff] (!%p159_p3)  ;;  %vm224_vm0 = vcmask (!%p159_p3), 1043456   ;;  %vm220_vm1 = vcmask (!%p159_p3), 31744  }
   0x7   : > { %162 = sbr.rel (%p159_p3) target bundleno = 238 (0xee), region = 32  ;;  %293 = vmatprep.mubr.f32.mxu0 (!%p159_p3), %v457_v0  ;;  %431 = vset.pattern.permute.xlu0 (!%p159_p3), %v458_v1  ;;  %v210_v5 = vld [vmem:[%s519_s1] sm:$0xff] (!%p159_p3) }
   0x8   : > { %215 = vperm.xlu0 (!%p159_p3), %431, %v212_v2  }
   0xe   : > { %s527_s12 = smov (!%p191_p4, %s447_s12), 1 }
   0xf   : > { %s403_s18 = sshll.u32 %s527_s12, 3  ;;  %s404_s24 = sshll.u32 %s527_s12, 4 }
  0x10   : > { %s198_s21 = scalar_lea.vmem %s518_s0, %s403_s18  ;;  %s208_s27 = scalar_lea.vmem %s521_s3, %s404_s24 }
  0x11   : > { %v211_v3 = vld [vmem:[%s198_s21] sm:$0xff] }
  0x12   : > { %v219_v4 = vcombine.high %v211_v3, %v211_v3 }
  0x14   : > { %398 = vmatprep.subr.msk.mxu0 %vm224_vm0, %v219_v4 }
  0x15   : > { %399 = vmatpush1.msk.msra.mxu0 %vm224_vm0, %v211_v3 }
  0x16   : > { %400 = vmatmul.mubr.msk.f32.vlgmr.msra.gmra.mrb[0].mxu0 %vm220_vm1, %v210_v5 }
  0x87   : > { %v216_v6 = vpop.permute.xlu0 %215 }
  0xe9   : > { %v295_v7 = vpop.f32.mrb[0].mxu0 }
  0xea   : > { %v296_v8 = vadd.f32 %v295_v7, %v216_v6  ;;  %v297_v9 = vpop.f32.mrb[1].mxu0 }
  0xeb   : > { %v298_v10 = vadd.f32 %v297_v9, %v216_v6 }
  0xec   : > { %300 = vst [vmem:[%s208_s27] sm:$0xff] %v296_v8 }
  0xed   : > { %301 = vst [vmem:[%s208_s27 + $0x8] sm:$0xff] %v298_v10 }
  0xee PF: > { %s13_s14 = sadd.s32 1, %s455_s14   ;;  %s522_s12 = smov %s451_s13 }
  0xef   : > { %p10_p5 = scmp.ge.s32.totalorder %s13_s14, 4   ;;  %s523_s13 = smov %s525_s15 }
  0xf1   :  { %12 = sbr.rel (!%p10_p5) target bundleno = 2 (0x2), region = 62 }

</bundles_post_ra>
